<compile_context>
chip_gen: v7x
topology: tpu7x:2x2x1
jax: 0.10.0
libtpu: 0.0.40
codegen_flags: <defaults>
</compile_context>

<pallas_src>
import jax
import jax.numpy as jnp
from jax.experimental import pallas as pl
from jax.experimental.pallas import tpu as pltpu


def _round_up(v, m):
    return ((v + m - 1) // m) * m


def _pick_tiles(n):
    # Tile sizes chosen against the smallest VMEM budget (v7x: 64 MiB phys,
    # 32 MiB scoped default).  tm divides tk in every branch so padding N to a
    # multiple of tk also aligns the row-tile axis.
    if n >= 512:
        return 256, 512
    if n >= 256:
        return 256, 256
    return 128, 128


def _gin_encoder_kernel(a_ref, x_ref, w1_ref, b1_ref, w2_ref, b2_ref, p_ref,
                        z_ref, gp_ref, acc_ref):
    # grid = (row_tiles, k_tiles); k is the reduction over A's columns.
    k = pl.program_id(1)

    @pl.when(k == 0)
    def _():
        acc_ref[...] = jnp.zeros_like(acc_ref)

    # A_hat tile arrives as bf16 (values exact); accumulate in f32.
    acc_ref[...] += jnp.dot(a_ref[...].astype(jnp.float32), x_ref[...],
                            preferred_element_type=jnp.float32)

    @pl.when(k == pl.num_programs(1) - 1)
    def _():
        agg = acc_ref[...]
        h1 = jnp.dot(agg, w1_ref[...],
                     preferred_element_type=jnp.float32) + b1_ref[...]
        h1 = jnp.maximum(h1, 0.0)
        z = jnp.dot(h1, w2_ref[...],
                    preferred_element_type=jnp.float32) + b2_ref[...]
        z = jnp.maximum(z, 0.0)
        z_ref[...] = z
        # Partial global-add-pool for this row tile; reduced over row tiles in
        # the wrapper so the row-tile grid axis stays "parallel".
        gp_ref[...] = jnp.dot(p_ref[...], z,
                              preferred_element_type=jnp.float32)[None]


def encoder_forward(x, edge_index, batch, num_graphs, params):
    """Fused GIN-encoder forward: returns (z [N, H], g [G, H])."""
    N, F = x.shape
    H = params["w1"].shape[1]
    eps = params["eps"]

    tm, tk = _pick_tiles(N)
    Np = _round_up(N, tk)          # multiple of both tm and tk
    Fp = _round_up(F, 128)
    Hp = _round_up(H, 128)
    Gp = _round_up(num_graphs, 8)
    n_row_tiles = Np // tm

    # ---- dense operands built in plain-JAX glue (zero-padded) -------------
    src, dst = edge_index[0], edge_index[1]
    a_hat = jnp.zeros((Np, Np), jnp.float32).at[dst, src].add(1.0)
    a_hat = a_hat + (1.0 + eps) * jnp.eye(Np, dtype=jnp.float32)
    a_hat = a_hat.astype(jnp.bfloat16)     # exact: 0, counts, 1+eps

    x_p = jnp.zeros((Np, Fp), jnp.float32).at[:N, :F].set(x)

    batch_p = jnp.full((Np,), -1, batch.dtype).at[:N].set(batch)
    pool = (batch_p[None, :] ==
            jnp.arange(Gp, dtype=batch.dtype)[:, None]).astype(jnp.float32)

    w1_p = jnp.zeros((Fp, Hp), jnp.float32).at[:F, :H].set(params["w1"])
    w2_p = jnp.zeros((Hp, Hp), jnp.float32).at[:H, :H].set(params["w2"])
    b1_p = jnp.zeros((1, Hp), jnp.float32).at[0, :H].set(params["b1"])
    b2_p = jnp.zeros((1, Hp), jnp.float32).at[0, :H].set(params["b2"])

    z_p, g_partial = pl.pallas_call(
        _gin_encoder_kernel,
        out_shape=(
            jax.ShapeDtypeStruct((Np, Hp), jnp.float32),
            jax.ShapeDtypeStruct((n_row_tiles, Gp, Hp), jnp.float32),
        ),
        grid=(n_row_tiles, Np // tk),
        in_specs=[
            pl.BlockSpec((tm, tk), lambda i, k: (i, k)),      # a_hat
            pl.BlockSpec((tk, Fp), lambda i, k: (k, 0)),      # x
            pl.BlockSpec((Fp, Hp), lambda i, k: (0, 0)),      # w1 (resident)
            pl.BlockSpec((1, Hp), lambda i, k: (0, 0)),       # b1
            pl.BlockSpec((Hp, Hp), lambda i, k: (0, 0)),      # w2 (resident)
            pl.BlockSpec((1, Hp), lambda i, k: (0, 0)),       # b2
            pl.BlockSpec((Gp, tm), lambda i, k: (0, i)),      # pool
        ],
        out_specs=(
            pl.BlockSpec((tm, Hp), lambda i, k: (i, 0)),      # z
            pl.BlockSpec((1, Gp, Hp), lambda i, k: (i, 0, 0)),  # partial g
        ),
        scratch_shapes=[pltpu.VMEM((tm, Fp), jnp.float32)],   # agg accumulator
        compiler_params=pltpu.CompilerParams(
            dimension_semantics=("parallel", "arbitrary"),
            vmem_limit_bytes=48 * 1024 * 1024),
    )(a_hat, x_p, w1_p, b1_p, w2_p, b2_p, pool)

    z = z_p[:N, :H]
    g = jnp.sum(g_partial, axis=0)[:num_graphs, :H]
    return z, g


def init_params(key, in_dim, hidden_dim):
    k1, k2, k3, k4 = jax.random.split(key, 4)
    scale1 = 1.0 / jnp.sqrt(jnp.float32(in_dim))
    scale2 = 1.0 / jnp.sqrt(jnp.float32(hidden_dim))
    return {
        "eps": 0.0,  # GIN eps (train_eps=False default)
        "w1": jax.random.normal(k1, (in_dim, hidden_dim), jnp.float32) * scale1,
        "b1": jnp.zeros((hidden_dim,), jnp.float32),
        "w2": jax.random.normal(k2, (hidden_dim, hidden_dim), jnp.float32) * scale2,
        "b2": jnp.zeros((hidden_dim,), jnp.float32),
        # project() heads (not used by forward(), kept for module fidelity):
        "local_fc_w": jax.random.normal(k3, (hidden_dim, hidden_dim), jnp.float32) * scale2,
        "global_fc_w": jax.random.normal(k4, (hidden_dim, hidden_dim), jnp.float32) * scale2,
    }


if __name__ == "__main__":
    key = jax.random.PRNGKey(0)
    k_x, k_e, k_p = jax.random.split(key, 3)

    N, F, H, E, G = 8, 4, 32, 16, 2

    x = jax.random.normal(k_x, (N, F), jnp.float32)
    edge_index = jax.random.randint(k_e, (2, E), 0, N, jnp.int32)
    batch = jnp.array([0, 0, 0, 0, 1, 1, 1, 1], jnp.int32)

    params = init_params(k_p, F, H)

    z, g = encoder_forward(x, edge_index, batch, G, params)
    jax.block_until_ready((z, g))

    # Plain-JAX reference to sanity-check the kernel.
    src, dst = edge_index[0], edge_index[1]
    a_ref = jnp.zeros((N, N), jnp.float32).at[dst, src].add(1.0) + jnp.eye(N)
    h1_ref = jnp.maximum(a_ref @ x @ params["w1"] + params["b1"], 0.0)
    z_ref = jnp.maximum(h1_ref @ params["w2"] + params["b2"], 0.0)
    pool_ref = (batch[None, :] == jnp.arange(G)[:, None]).astype(jnp.float32)
    g_ref = pool_ref @ z_ref

    assert z.shape == (N, H) and g.shape == (G, H)
    assert jnp.allclose(z, z_ref, atol=1e-4, rtol=1e-4)
    assert jnp.allclose(g, g_ref, atol=1e-4, rtol=1e-4)

    print("KERNEL_OK")
</pallas_src>

<mosaic_0001>
module attributes {stable_mosaic.version = 11 : i64} {
  func.func @_gin_encoder_kernel(%arg0: i32, %arg1: i32, %arg2: memref<128x128xbf16, #tpu.memory_space<vmem>>, %arg3: memref<128x128xf32, #tpu.memory_space<vmem>>, %arg4: memref<128x128xf32, #tpu.memory_space<vmem>>, %arg5: memref<1x128xf32, #tpu.memory_space<vmem>>, %arg6: memref<128x128xf32, #tpu.memory_space<vmem>>, %arg7: memref<1x128xf32, #tpu.memory_space<vmem>>, %arg8: memref<8x128xf32, #tpu.memory_space<vmem>>, %arg9: memref<128x128xf32, #tpu.memory_space<vmem>>, %arg10: memref<1x8x128xf32, #tpu.memory_space<vmem>>, %arg11: memref<128x128xf32, #tpu.memory_space<vmem>>) attributes {dimension_semantics = [#tpu.dimension_semantics<parallel>, #tpu.dimension_semantics<arbitrary>], iteration_bounds = array<i64: 1, 1>, scalar_prefetch = 0 : i64, scratch_operands = 1 : i64, tpu.core_type = #tpu.core_type<tc>, window_params = [{transform_indices = @transform_0, window_bounds = array<i64: 128, 128>}, {transform_indices = @transform_1, window_bounds = array<i64: 128, 128>}, {pipeline_mode = #tpu.pipeline_mode<synchronous>, transform_indices = @transform_2, window_bounds = array<i64: 128, 128>}, {pipeline_mode = #tpu.pipeline_mode<synchronous>, transform_indices = @transform_3, window_bounds = array<i64: 1, 128>}, {pipeline_mode = #tpu.pipeline_mode<synchronous>, transform_indices = @transform_4, window_bounds = array<i64: 128, 128>}, {pipeline_mode = #tpu.pipeline_mode<synchronous>, transform_indices = @transform_5, window_bounds = array<i64: 1, 128>}, {transform_indices = @transform_6, window_bounds = array<i64: 8, 128>}, {transform_indices = @transform_7, window_bounds = array<i64: 128, 128>}, {transform_indices = @transform_8, window_bounds = array<i64: 1, 8, 128>}]} {
    %c0_i32 = arith.constant 0 : i32
    %0 = arith.cmpi eq, %arg1, %c0_i32 : i32
    %1 = arith.extui %0 : i1 to i32
    %c0_i32_0 = arith.constant 0 : i32
    %2 = arith.cmpi ne, %1, %c0_i32_0 : i32
    scf.if %2 {
      %cst_10 = arith.constant 0.000000e+00 : f32
      %13 = vector.broadcast %cst_10 : f32 to vector<128x128xf32>
      %c0_11 = arith.constant 0 : index
      %c0_12 = arith.constant 0 : index
      %14 = vector.load %arg11[%c0_11, %c0_12] : memref<128x128xf32, #tpu.memory_space<vmem>>, vector<128x128xf32>
      tpu.vector_store %arg11[%c0_11, %c0_12], %13 {strides = array<i32>} : memref<128x128xf32, #tpu.memory_space<vmem>>, vector<128x128xf32>,
    } else {
    }
    %c0 = arith.constant 0 : index
    %c0_1 = arith.constant 0 : index
    %3 = vector.load %arg11[%c0, %c0_1] : memref<128x128xf32, #tpu.memory_space<vmem>>, vector<128x128xf32>
    %c0_2 = arith.constant 0 : index
    %c0_3 = arith.constant 0 : index
    %4 = vector.load %arg2[%c0_2, %c0_3] : memref<128x128xbf16, #tpu.memory_space<vmem>>, vector<128x128xbf16>
    %5 = arith.extf %4 : vector<128x128xbf16> to vector<128x128xf32>
    %c0_4 = arith.constant 0 : index
    %c0_5 = arith.constant 0 : index
    %6 = vector.load %arg3[%c0_4, %c0_5] : memref<128x128xf32, #tpu.memory_space<vmem>>, vector<128x128xf32>
    %cst = arith.constant dense<0.000000e+00> : vector<128x128xf32>
    %7 = tpu.matmul %5, %6, %cst {dimension_numbers = #tpu.dot_dimension_numbers<[1], [0], [0], [1], [0, 0, 1, 1], [], []>} : vector<128x128xf32>, vector<128x128xf32>, vector<128x128xf32> -> vector<128x128xf32>
    %8 = arith.addf %3, %7 : vector<128x128xf32>
    %c0_6 = arith.constant 0 : index
    %c0_7 = arith.constant 0 : index
    %9 = vector.load %arg11[%c0_6, %c0_7] : memref<128x128xf32, #tpu.memory_space<vmem>>, vector<128x128xf32>
    tpu.vector_store %arg11[%c0_6, %c0_7], %8 {strides = array<i32>} : memref<128x128xf32, #tpu.memory_space<vmem>>, vector<128x128xf32>,
    %c0_i32_8 = arith.constant 0 : i32
    %10 = arith.cmpi eq, %arg1, %c0_i32_8 : i32
    %11 = arith.extui %10 : i1 to i32
    %c0_i32_9 = arith.constant 0 : i32
    %12 = arith.cmpi ne, %11, %c0_i32_9 : i32
    scf.if %12 {
      %c0_10 = arith.constant 0 : index
      %c0_11 = arith.constant 0 : index
      %13 = vector.load %arg11[%c0_10, %c0_11] : memref<128x128xf32, #tpu.memory_space<vmem>>, vector<128x128xf32>
      %c0_12 = arith.constant 0 : index
      %c0_13 = arith.constant 0 : index
      %14 = vector.load %arg4[%c0_12, %c0_13] : memref<128x128xf32, #tpu.memory_space<vmem>>, vector<128x128xf32>
      %cst_14 = arith.constant dense<0.000000e+00> : vector<128x128xf32>
      %15 = tpu.matmul %13, %14, %cst_14 {dimension_numbers = #tpu.dot_dimension_numbers<[1], [0], [0], [1], [0, 0, 1, 1], [], []>} : vector<128x128xf32>, vector<128x128xf32>, vector<128x128xf32> -> vector<128x128xf32>
      %c0_15 = arith.constant 0 : index
      %c0_16 = arith.constant 0 : index
      %16 = vector.load %arg5[%c0_15, %c0_16] : memref<1x128xf32, #tpu.memory_space<vmem>>, vector<1x128xf32>
      %17 = vector.broadcast %16 : vector<1x128xf32> to vector<128x128xf32>
      %18 = arith.addf %15, %17 : vector<128x128xf32>
      %cst_17 = arith.constant 0.000000e+00 : f32
      %19 = vector.broadcast %cst_17 : f32 to vector<128x128xf32>
      %20 = arith.maximumf %18, %19 : vector<128x128xf32>
      %c0_18 = arith.constant 0 : index
      %c0_19 = arith.constant 0 : index
      %21 = vector.load %arg6[%c0_18, %c0_19] : memref<128x128xf32, #tpu.memory_space<vmem>>, vector<128x128xf32>
      %cst_20 = arith.constant dense<0.000000e+00> : vector<128x128xf32>
      %22 = tpu.matmul %20, %21, %cst_20 {dimension_numbers = #tpu.dot_dimension_numbers<[1], [0], [0], [1], [0, 0, 1, 1], [], []>} : vector<128x128xf32>, vector<128x128xf32>, vector<128x128xf32> -> vector<128x128xf32>
      %c0_21 = arith.constant 0 : index
      %c0_22 = arith.constant 0 : index
      %23 = vector.load %arg7[%c0_21, %c0_22] : memref<1x128xf32, #tpu.memory_space<vmem>>, vector<1x128xf32>
      %24 = vector.broadcast %23 : vector<1x128xf32> to vector<128x128xf32>
      %25 = arith.addf %22, %24 : vector<128x128xf32>
      %cst_23 = arith.constant 0.000000e+00 : f32
      %26 = vector.broadcast %cst_23 : f32 to vector<128x128xf32>
      %27 = arith.maximumf %25, %26 : vector<128x128xf32>
      %c0_24 = arith.constant 0 : index
      %c0_25 = arith.constant 0 : index
      %28 = vector.load %arg9[%c0_24, %c0_25] : memref<128x128xf32, #tpu.memory_space<vmem>>, vector<128x128xf32>
      tpu.vector_store %arg9[%c0_24, %c0_25], %27 {strides = array<i32>} : memref<128x128xf32, #tpu.memory_space<vmem>>, vector<128x128xf32>,
      %c0_26 = arith.constant 0 : index
      %c0_27 = arith.constant 0 : index
      %29 = vector.load %arg8[%c0_26, %c0_27] : memref<8x128xf32, #tpu.memory_space<vmem>>, vector<8x128xf32>
      %cst_28 = arith.constant dense<0.000000e+00> : vector<8x128xf32>
      %30 = tpu.matmul %29, %27, %cst_28 {dimension_numbers = #tpu.dot_dimension_numbers<[1], [0], [0], [1], [0, 0, 1, 1], [], []>} : vector<8x128xf32>, vector<128x128xf32>, vector<8x128xf32> -> vector<8x128xf32>
      %31 = vector.shape_cast %30 : vector<8x128xf32> to vector<1x8x128xf32>
      %c0_29 = arith.constant 0 : index
      %c0_30 = arith.constant 0 : index
      %c0_31 = arith.constant 0 : index
      %32 = vector.load %arg10[%c0_29, %c0_30, %c0_31] : memref<1x8x128xf32, #tpu.memory_space<vmem>>, vector<1x8x128xf32>
      tpu.vector_store %arg10[%c0_29, %c0_30, %c0_31], %31 {strides = array<i32>} : memref<1x8x128xf32, #tpu.memory_space<vmem>>, vector<1x8x128xf32>,
    } else {
    }
    return
  }
  func.func @transform_0(%arg0: i32, %arg1: i32) -> (i32, i32) {
    %c0_i32 = arith.constant 0 : i32
    return %arg0, %arg1 : i32, i32
  }
  func.func @transform_1(%arg0: i32, %arg1: i32) -> (i32, i32) {
    %c0_i32 = arith.constant 0 : i32
    %c0_i32_0 = arith.constant 0 : i32
    return %arg1, %c0_i32 : i32, i32
  }
  func.func @transform_2(%arg0: i32, %arg1: i32) -> (i32, i32) {
    %c0_i32 = arith.constant 0 : i32
    %c0_i32_0 = arith.constant 0 : i32
    %c0_i32_1 = arith.constant 0 : i32
    return %c0_i32, %c0_i32_0 : i32, i32
  }
  func.func @transform_3(%arg0: i32, %arg1: i32) -> (i32, i32) {
    %c0_i32 = arith.constant 0 : i32
    %c0_i32_0 = arith.constant 0 : i32
    %c0_i32_1 = arith.constant 0 : i32
    return %c0_i32, %c0_i32_0 : i32, i32
  }
  func.func @transform_4(%arg0: i32, %arg1: i32) -> (i32, i32) {
    %c0_i32 = arith.constant 0 : i32
    %c0_i32_0 = arith.constant 0 : i32
    %c0_i32_1 = arith.constant 0 : i32
    return %c0_i32, %c0_i32_0 : i32, i32
  }
  func.func @transform_5(%arg0: i32, %arg1: i32) -> (i32, i32) {
    %c0_i32 = arith.constant 0 : i32
    %c0_i32_0 = arith.constant 0 : i32
    %c0_i32_1 = arith.constant 0 : i32
    return %c0_i32, %c0_i32_0 : i32, i32
  }
  func.func @transform_6(%arg0: i32, %arg1: i32) -> (i32, i32) {
    %c0_i32 = arith.constant 0 : i32
    %c0_i32_0 = arith.constant 0 : i32
    return %c0_i32, %arg0 : i32, i32
  }
  func.func @transform_7(%arg0: i32, %arg1: i32) -> (i32, i32) {
    %c0_i32 = arith.constant 0 : i32
    %c0_i32_0 = arith.constant 0 : i32
    return %arg0, %c0_i32 : i32, i32
  }
  func.func @transform_8(%arg0: i32, %arg1: i32) -> (i32, i32, i32) {
    %c0_i32 = arith.constant 0 : i32
    %c0_i32_0 = arith.constant 0 : i32
    %c0_i32_1 = arith.constant 0 : i32
    return %arg0, %c0_i32, %c0_i32_0 : i32, i32, i32
  }
}

</mosaic_0001>

<bundles_post_ra>
// kernel: tpu_custom_call.1
= control target key start
LH: loop header
LB: loop body
LE: loop exit
PB: predicated region body
PF: predicated region fallthrough
CT: control target
= control target key end

     0   :  { %14 = vsyncpa [#allocation4], 0  ;;  %s1674_s0 = inlined_call_operand.hbm [shape: bf16[128,128], index: 0, kind: input, shape index: {}]   ;;  %s1675_s1 = inlined_call_operand.hbm [shape: f32[128,128], index: 1, kind: input, shape index: {}]   ;;  %s1676_s2 = inlined_call_operand.hbm [shape: f32[128,128], index: 2, kind: input, shape index: {}]   ;;  %s1677_s3 = inlined_call_operand.vmem [shape: f32[1,128], index: 3, kind: input, shape index: {}]   ;;  %s1678_s4 = inlined_call_operand.hbm [shape: f32[128,128], index: 4, kind: input, shape index: {}]   ;;  %s1679_s5 = inlined_call_operand.vmem [shape: f32[1,128], index: 5, kind: input, shape index: {}]   ;;  %s1680_s6 = inlined_call_operand.vmem [shape: f32[8,128], index: 6, kind: input, shape index: {}]   ;;  %s1681_s7 = inlined_call_operand.hbm [shape: f32[128,128], index: 7, kind: output, shape index: {0}]   ;;  %s1682_s8 = inlined_call_operand.hbm [shape: f32[1,8,128], index: 8, kind: output, shape index: {1}]  }
   0x1   :  { %15 = vsyncpa [#allocation7], 0 }
   0x2   :  { %16 = vsyncpa [#allocation10], 0 }
   0x3   :  { %17 = vsyncpa [#allocation5], 0 }
   0x4   :  { %18 = vsyncpa [#allocation13], 0  ;;  %s1486_s27 = smov [#allocation6]   ;;  %s1344_s9 = scalar_lea.hbm %s1675_s1, 2048 }
   0x5   :  { %s36_s28 = sshll.u32 %s1486_s27, 4  ;;  %p1345_p0 = scmp.ne.s32.totalorder %s1675_s1, %s1344_s9  ;;  %s37_s28 = int_to_ptr.vmem [resolvable:$true] %s36_s28 }
   0x6   :  { %p1348_p1 = scmp.lt.u32.totalorder %s1344_s9, %s1675_s1 }
   0x8   :  { %p1350_p2 = pnand %p1348_p1, %p1345_p0 }
   0xa   :  { %1353 = shalt.err (!%p1350_p2)
}
   0xb   :  { %s1354_s14 = scalar_lea.vmem %s37_s28, 2048  ;;  %p1359_p4 = scmp.lt.s32.totalorder %s37_s28, %s37_s28 }
   0xc   :  { %p1355_p3 = scmp.ne.s32.totalorder %s37_s28, %s1354_s14  ;;  %p1360_p5 = scmp.lt.s32.totalorder %s1354_s14, %s1354_s14 }
   0xe   :  { %p1361_p6 = por %p1360_p5, %p1359_p4 }
  0x10   :  { %p1362_p7 = pnand %p1361_p6, %p1355_p3 }
  0x12   :  { %1365 = shalt.err (!%p1362_p7)
}
  0x13   :  { %s1487_s15 = smov 128   ;;  %s1488_s16 = smov 8  }
  0x14   :  { %42 = dma.hbm_to_vmem [thread:$0]  %s1675_s1, 2048, %s37_s28, [#allocation7], %s1487_s15, %s1487_s15, %s1488_s16  }
  0x15   :  { %s1489_s19 = smov [#allocation3]   ;;  %s1366_s23 = scalar_lea.hbm %s1674_s0, 1024 }
  0x16   :  { %s24_s20 = sshll.u32 %s1489_s19, 4  ;;  %p1367_p8 = scmp.ne.s32.totalorder %s1674_s0, %s1366_s23  ;;  %s25_s20 = int_to_ptr.vmem [resolvable:$true] %s24_s20 }
  0x17   :  { %p1370_p9 = scmp.lt.u32.totalorder %s1366_s23, %s1674_s0 }
  0x19   :  { %p1372_p10 = pnand %p1370_p9, %p1367_p8 }
  0x1b   :  { %1375 = shalt.err (!%p1372_p10)
}
  0x1c   :  { %s1376_s29 = scalar_lea.vmem %s25_s20, 1024  ;;  %p1381_p12 = scmp.lt.s32.totalorder %s25_s20, %s25_s20 }
  0x1d   :  { %p1377_p11 = scmp.ne.s32.totalorder %s25_s20, %s1376_s29  ;;  %p1382_p13 = scmp.lt.s32.totalorder %s1376_s29, %s1376_s29 }
  0x1f   :  { %p1383_p0 = por %p1382_p13, %p1381_p12 }
  0x21   :  { %p1384_p1 = pnand %p1383_p0, %p1377_p11 }
  0x23   :  { %1387 = shalt.err (!%p1384_p1)
}
  0x24   :  { %s1490_s1 = smov 64   ;;  %s1491_s28 = smov 4  }
  0x25   :  { %30 = dma.hbm_to_vmem [thread:$0]  %s1674_s0, 1024, %s25_s20, [#allocation4], %s1490_s1, %s1490_s1, %s1491_s28  }
  0x26   :  { %s1492_s10 = smov [#allocation8]   ;;  %s1493_s12 = smov [#allocation9]  }
  0x27   :  { %s48_s11 = sshll.u32 %s1492_s10, 4  ;;  %s62_s13 = sshll.u32 %s1493_s12, 4  ;;  %s49_s11 = int_to_ptr.vmem [resolvable:$true] %s48_s11  ;;  %s1571_s13 = int_to_ptr.vmem [resolvable:$true] %s62_s13 }
  0x28   :  { %s1388_s18 = scalar_lea.hbm %s1676_s2, 2048 }
  0x29   :  { %p1389_p2 = scmp.ne.s32.totalorder %s1676_s2, %s1388_s18  ;;  %p1392_p3 = scmp.lt.u32.totalorder %s1388_s18, %s1676_s2 }
  0x2b   :  { %p1394_p4 = pnand %p1392_p3, %p1389_p2 }
  0x2d   :  { %1397 = shalt.err (!%p1394_p4)
}
  0x2e   :  { %s1398_s0 = scalar_lea.vmem %s49_s11, 2048  ;;  %p1403_p6 = scmp.lt.s32.totalorder %s49_s11, %s49_s11 }
  0x2f   :  { %p1399_p5 = scmp.ne.s32.totalorder %s49_s11, %s1398_s0  ;;  %p1404_p7 = scmp.lt.s32.totalorder %s1398_s0, %s1398_s0 }
  0x31   :  { %p1405_p8 = por %p1404_p7, %p1403_p6 }
  0x33   :  { %p1406_p9 = pnand %p1405_p8, %p1399_p5 }
  0x35   :  { %1409 = shalt.err (!%p1406_p9)
}
  0x36   :  { %54 = dma.hbm_to_vmem [thread:$0]  %s1676_s2, 2048, %s49_s11, [#allocation7], %s1487_s15, %s1487_s15, %s1488_s16  }
  0x37   :  { %s1410_s27 = scalar_lea.hbm %s1678_s4, 2048 }
  0x38   :  { %p1411_p10 = scmp.ne.s32.totalorder %s1678_s4, %s1410_s27  ;;  %p1414_p11 = scmp.lt.u32.totalorder %s1410_s27, %s1678_s4 }
  0x3a   :  { %p1416_p12 = pnand %p1414_p11, %p1411_p10 }
  0x3c   :  { %1419 = shalt.err (!%p1416_p12)
}
  0x3d   :  { %s1420_s9 = scalar_lea.vmem %s1571_s13, 2048  ;;  %p1425_p0 = scmp.lt.s32.totalorder %s1571_s13, %s1571_s13 }
  0x3e   :  { %p1421_p13 = scmp.ne.s32.totalorder %s1571_s13, %s1420_s9  ;;  %p1426_p1 = scmp.lt.s32.totalorder %s1420_s9, %s1420_s9 }
  0x40   :  { %p1427_p2 = por %p1426_p1, %p1425_p0 }
  0x42   :  { %p1428_p3 = pnand %p1427_p2, %p1421_p13 }
  0x44   :  { %1431 = shalt.err (!%p1428_p3)
}
  0x45   :  { %68 = dma.hbm_to_vmem [thread:$0]  %s1678_s4, 2048, %s1571_s13, [#allocation10], %s1487_s15, %s1487_s15, %s1488_s16  }
  0x46   :  { %1476 = dma.done.wait [#allocation4], 1024  }
  0x47   :  { %1477 = vsyncadd [#allocation4], 4294966272 }
  0x48   :  { %1478 = dma.done.wait [#allocation7], 4096  }
  0x49   :  { %1479 = vsyncadd [#allocation7], 4294963200 }
  0x4a   :  { %1480 = dma.done.wait [#allocation10], 2048  }
  0x4b   :  { %1481 = vsyncadd [#allocation10], 4294965248  ;;  %v153_v0 = vld [vmem:[#allocation6] sm:$0xff]  ;;  %v154_v1 = vld [vmem:[#allocation6 + $0x8] sm:$0xff]  ;;  %vm1495_vm0 = vmmov 0   ;;  %s1497_s14 = smov [#allocation11]  }
  0x4c   :  { %v155_v2 = vld [vmem:[#allocation6 + $0x10] sm:$0xff]  ;;  %v1211_v3 = vpack.c.bf16 %v154_v1, %v153_v0  ;;  %v156_v4 = vld [vmem:[#allocation6 + $0x18] sm:$0xff]  ;;  %v157_v6 = vld [vmem:[#allocation6 + $0x20] sm:$0xff]  ;;  %s826_s17 = sshll.u32 %s1497_s14, 4  ;;  %s827_s17 = int_to_ptr.vmem [resolvable:$true] %s826_s17 }
  0x4d   :  { %v1215_v5 = vpack.c.bf16 %v156_v4, %v155_v2  ;;  %v158_v7 = vld [vmem:[#allocation6 + $0x28] sm:$0xff]  ;;  %v1608_v9 = vld [vmem:[#allocation3] sm:$0xff]   ;;  %v159_v10 = vld [vmem:[#allocation6 + $0x30] sm:$0xff]  ;;  %s1432_s18 = scalar_lea.vmem %s827_s17, 2048  ;;  %p1437_p5 = scmp.lt.s32.totalorder %s827_s17, %s827_s17 }
  0x4e   :  { %1212 = vmatprep.subr.bf16.mxu0 %v1211_v3  ;;  %v1219_v8 = vpack.c.bf16 %v158_v7, %v157_v6  ;;  %v160_v11 = vld [vmem:[#allocation6 + $0x38] sm:$0xff]  ;;  %v858_v12 = vunpack.c.l.bf16 %v1608_v9  ;;  %v365_v13 = vld [vmem:[#allocation8] sm:$0xff]  ;;  %v366_v14 = vld [vmem:[#allocation8 + $0x8] sm:$0xff]  ;;  %v859_v48 = vunpack.c.h.bf16 %v1608_v9  ;;  %p1433_p4 = scmp.ne.s32.totalorder %s827_s17, %s1432_s18  ;;  %p1438_p6 = scmp.lt.s32.totalorder %s1432_s18, %s1432_s18 }
  0x4f   :  { %1214 = vmatpush3.bf16.msra.mxu0 %v1211_v3  ;;  %v367_v15 = vld [vmem:[#allocation8 + $0x10] sm:$0xff]  ;;  %v1223_v16 = vpack.c.bf16 %v160_v11, %v159_v10  ;;  %v368_v17 = vld [vmem:[#allocation8 + $0x18] sm:$0xff]  ;;  %v161_v18 = vld [vmem:[#allocation6 + $0x40] sm:$0xff]  ;;  %v1243_v20 = vpack.c.bf16 %v366_v14, %v365_v13 }
  0x50   :  { %1216 = vmatprep.subr.bf16.mxu0 %v1215_v5  ;;  %1040 = vmatprep.mubr.f32.mxu0 %v858_v12  ;;  %v162_v19 = vld [vmem:[#allocation6 + $0x48] sm:$0xff]  ;;  %v1247_v21 = vpack.c.bf16 %v368_v17, %v367_v15  ;;  %v369_v22 = vld [vmem:[#allocation8 + $0x20] sm:$0xff]  ;;  %v163_v25 = vld [vmem:[#allocation6 + $0x50] sm:$0xff]  ;;  %p1439_p7 = por %p1438_p6, %p1437_p5 }
  0x51   :  { %v370_v23 = vld [vmem:[#allocation8 + $0x28] sm:$0xff]  ;;  %1244 = vmatprep.subr.bf16.mxu1 %v1243_v20  ;;  %v1227_v24 = vpack.c.bf16 %v162_v19, %v161_v18  ;;  %v164_v26 = vld [vmem:[#allocation6 + $0x58] sm:$0xff]  ;;  %v371_v28 = vld [vmem:[#allocation8 + $0x30] sm:$0xff] }
  0x52   :  { %1246 = vmatpush3.bf16.msra.mxu1 %v1243_v20  ;;  %v1251_v27 = vpack.c.bf16 %v370_v23, %v369_v22  ;;  %v372_v29 = vld [vmem:[#allocation8 + $0x38] sm:$0xff]  ;;  %v1231_v30 = vpack.c.bf16 %v164_v26, %v163_v25  ;;  %v165_v31 = vld [vmem:[#allocation6 + $0x60] sm:$0xff]  ;;  %v166_v32 = vld [vmem:[#allocation6 + $0x68] sm:$0xff]  ;;  %p1440_p8 = pnand %p1439_p7, %p1433_p4 }
  0x53   :  { %1218 = vmatpush3.bf16.msra.mxu0 %v1215_v5  ;;  %1248 = vmatprep.subr.bf16.mxu1 %v1247_v21  ;;  %v1255_v33 = vpack.c.bf16 %v372_v29, %v371_v28  ;;  %v373_v34 = vld [vmem:[#allocation8 + $0x40] sm:$0xff]  ;;  %v374_v35 = vld [vmem:[#allocation8 + $0x48] sm:$0xff]  ;;  %v1235_v36 = vpack.c.bf16 %v166_v32, %v165_v31  ;;  %v167_v37 = vld [vmem:[#allocation6 + $0x70] sm:$0xff] }
  0x54   :  { %1220 = vmatprep.subr.bf16.mxu0 %v1219_v8  ;;  %v168_v38 = vld [vmem:[#allocation6 + $0x78] sm:$0xff]  ;;  %v1259_v39 = vpack.c.bf16 %v374_v35, %v373_v34  ;;  %v375_v40 = vld [vmem:[#allocation8 + $0x50] sm:$0xff]  ;;  %v377_v44 = vld [vmem:[#allocation8 + $0x60] sm:$0xff] }
  0x55   :  { %v376_v41 = vld [vmem:[#allocation8 + $0x58] sm:$0xff]  ;;  %v1239_v42 = vpack.c.bf16 %v168_v38, %v167_v37  ;;  %v378_v45 = vld [vmem:[#allocation8 + $0x68] sm:$0xff]  ;;  %v379_v49 = vld [vmem:[#allocation8 + $0x70] sm:$0xff] }
  0x56   :  { %1250 = vmatpush3.bf16.msra.mxu1 %v1247_v21  ;;  %v1263_v43 = vpack.c.bf16 %v376_v41, %v375_v40  ;;  %v888_v46 = vld [vmem:[#allocation3 + $0x8] sm:$0xff]   ;;  %v1267_v47 = vpack.c.bf16 %v378_v45, %v377_v44  ;;  %v380_v50 = vld [vmem:[#allocation8 + $0x78] sm:$0xff]  ;;  %v889_v52 = vld [vmem:[#allocation3 + $0x10] sm:$0xff]  }
  0x57   :  { %1222 = vmatpush3.bf16.msra.mxu0 %v1219_v8  ;;  %1252 = vmatprep.subr.bf16.mxu1 %v1251_v27  ;;  %v862_v51 = vunpack.c.l.bf16 %v888_v46  ;;  %v1271_v53 = vpack.c.bf16 %v380_v50, %v379_v49  ;;  %v863_v54 = vunpack.c.h.bf16 %v888_v46  ;;  %v866_v55 = vunpack.c.l.bf16 %v889_v52  ;;  %v890_v56 = vld [vmem:[#allocation3 + $0x18] sm:$0xff]   ;;  %v891_v59 = vld [vmem:[#allocation3 + $0x20] sm:$0xff]   ;;  %v892_v62 = vld [vmem:[#allocation3 + $0x28] sm:$0xff]  }
  0x58   :  { %1224 = vmatprep.subr.bf16.mxu0 %v1223_v16  ;;  %v867_v57 = vunpack.c.h.bf16 %v889_v52  ;;  %v870_v58 = vunpack.c.l.bf16 %v890_v56  ;;  %v871_v60 = vunpack.c.h.bf16 %v890_v56  ;;  %v874_v61 = vunpack.c.l.bf16 %v891_v59  ;;  %v893_v1 = vld [vmem:[#allocation3 + $0x30] sm:$0xff]   ;;  %v894_v4 = vld [vmem:[#allocation3 + $0x38] sm:$0xff]   ;;  %v549_v8 = vld [vmem:[#allocation9] sm:$0xff] }
  0x59   :  { %v875_v63 = vunpack.c.h.bf16 %v891_v59  ;;  %v878_v0 = vunpack.c.l.bf16 %v892_v62  ;;  %v879_v2 = vunpack.c.h.bf16 %v892_v62  ;;  %v882_v3 = vunpack.c.l.bf16 %v893_v1  ;;  %v550_v9 = vld [vmem:[#allocation9 + $0x8] sm:$0xff]  ;;  %v551_v10 = vld [vmem:[#allocation9 + $0x10] sm:$0xff]  ;;  %v552_v12 = vld [vmem:[#allocation9 + $0x18] sm:$0xff] }
  0x5a   :  { %1254 = vmatpush3.bf16.msra.mxu1 %v1251_v27  ;;  %v883_v5 = vunpack.c.h.bf16 %v893_v1  ;;  %v886_v6 = vunpack.c.l.bf16 %v894_v4  ;;  %v887_v7 = vunpack.c.h.bf16 %v894_v4  ;;  %v1275_v11 = vpack.c.bf16 %v550_v9, %v549_v8  ;;  %v553_v14 = vld [vmem:[#allocation9 + $0x20] sm:$0xff]  ;;  %v554_v15 = vld [vmem:[#allocation9 + $0x28] sm:$0xff]  ;;  %v555_v17 = vld [vmem:[#allocation9 + $0x30] sm:$0xff] }
  0x5b   :  { %1226 = vmatpush3.bf16.msra.mxu0 %v1223_v16  ;;  %1256 = vmatprep.subr.bf16.mxu1 %v1255_v33  ;;  %v1279_v13 = vpack.c.bf16 %v552_v12, %v551_v10  ;;  %v1283_v16 = vpack.c.bf16 %v554_v15, %v553_v14  ;;  %v556_v18 = vld [vmem:[#allocation9 + $0x38] sm:$0xff]  ;;  %v557_v20 = vld [vmem:[#allocation9 + $0x40] sm:$0xff]  ;;  %v558_v21 = vld [vmem:[#allocation9 + $0x48] sm:$0xff] }
  0x5c   :  { %1228 = vmatprep.subr.bf16.mxu0 %v1227_v24  ;;  %v1287_v19 = vpack.c.bf16 %v556_v18, %v555_v17  ;;  %v1291_v22 = vpack.c.bf16 %v558_v21, %v557_v20  ;;  %v559_v23 = vld [vmem:[#allocation9 + $0x50] sm:$0xff]  ;;  %v561_v26 = vld [vmem:[#allocation9 + $0x60] sm:$0xff]  ;;  %v562_v27 = vld [vmem:[#allocation9 + $0x68] sm:$0xff] }
  0x5d   :  { %v1299_v28 = vpack.c.bf16 %v562_v27, %v561_v26  ;;  %v563_v45 = vld [vmem:[#allocation9 + $0x70] sm:$0xff]  ;;  %v564_v46 = vld [vmem:[#allocation9 + $0x78] sm:$0xff] }
  0x5e   :  { %1258 = vmatpush3.bf16.msra.mxu1 %v1255_v33 }
  0x5f   :  { %1230 = vmatpush3.bf16.msra.mxu0 %v1227_v24  ;;  %1260 = vmatprep.subr.bf16.mxu1 %v1259_v39  ;;  %v560_v24 = vld [vmem:[#allocation9 + $0x58] sm:$0xff] }
  0x60   :  { %1232 = vmatprep.subr.bf16.mxu0 %v1231_v30  ;;  %v1295_v25 = vpack.c.bf16 %v560_v24, %v559_v23 }
  0x62   :  { %1262 = vmatpush3.bf16.msra.mxu1 %v1259_v39 }
  0x63   :  { %1234 = vmatpush3.bf16.msra.mxu0 %v1231_v30  ;;  %1264 = vmatprep.subr.bf16.mxu1 %v1263_v43 }
  0x64   :  { %1236 = vmatprep.subr.bf16.mxu0 %v1235_v36 }
  0x66   :  { %1266 = vmatpush3.bf16.msra.mxu1 %v1263_v43 }
  0x67   :  { %1238 = vmatpush3.bf16.msra.mxu0 %v1235_v36  ;;  %1268 = vmatprep.subr.bf16.mxu1 %v1267_v47 }
  0x68   :  { %1240 = vmatprep.subr.bf16.mxu0 %v1239_v42 }
  0x6a   :  { %1270 = vmatpush3.bf16.msra.mxu1 %v1267_v47  ;;  %v1303_v47 = vpack.c.bf16 %v564_v46, %v563_v45 }
  0x6b   :  { %1242 = vmatpush3.bf16.msra.mxu0 %v1239_v42  ;;  %1272 = vmatprep.subr.bf16.mxu1 %v1271_v53 }
  0x6c   :  { %1276 = vmatprep.subr.bf16.mxu0 %v1275_v11 }
  0x6e   :  { %1041 = vmatmul.mubr.f32.vlgmr.msra.gmra.mrb[0].mxu0 %v859_v48  ;;  %1274 = vmatpush3.bf16.msra.mxu1 %v1271_v53  ;;  %v854_v48 = vld [vmem:[%s1677_s3] ss:$0 sm:$0xff] }
  0x6f   :  { %1043 = vmatprep.mubr.f32.mxu0 %v862_v51  ;;  %1278 = vmatpush3.bf16.msra.mxu0 %v1275_v11 }
  0x70   :  { %1280 = vmatprep.subr.bf16.mxu0 %v1279_v13 }
  0x72   :  { %1044 = vmatmul.mubr.f32.gmra.mrb[2].mxu0 %v863_v54 }
  0x73   :  { %1046 = vmatprep.mubr.f32.mxu0 %v866_v55  ;;  %1282 = vmatpush3.bf16.msra.mxu0 %v1279_v13 }
  0x74   :  { %1284 = vmatprep.subr.bf16.mxu0 %v1283_v16 }
  0x76   :  { %1047 = vmatmul.mubr.f32.gmra.mrb[4].mxu0 %v867_v57 }
  0x77   :  { %1049 = vmatprep.mubr.f32.mxu0 %v870_v58  ;;  %1286 = vmatpush3.bf16.msra.mxu0 %v1283_v16 }
  0x78   :  { %1288 = vmatprep.subr.bf16.mxu0 %v1287_v19 }
  0x7a   :  { %1050 = vmatmul.mubr.f32.gmra.mrb[6].mxu0 %v871_v60 }
  0x7b   :  { %1052 = vmatprep.mubr.f32.mxu0 %v874_v61  ;;  %1290 = vmatpush3.bf16.msra.mxu0 %v1287_v19 }
  0x7c   :  { %1292 = vmatprep.subr.bf16.mxu0 %v1291_v22 }
  0x7e   :  { %1053 = vmatmul.mubr.f32.gmra.mrb[8].mxu0 %v875_v63 }
  0x7f   :  { %1055 = vmatprep.mubr.f32.mxu0 %v878_v0  ;;  %1294 = vmatpush3.bf16.msra.mxu0 %v1291_v22 }
  0x80   :  { %1296 = vmatprep.subr.bf16.mxu0 %v1295_v25 }
  0x82   :  { %1056 = vmatmul.mubr.f32.gmra.mrb[10].mxu0 %v879_v2 }
  0x83   :  { %1058 = vmatprep.mubr.f32.mxu0 %v882_v3  ;;  %1298 = vmatpush3.bf16.msra.mxu0 %v1295_v25 }
  0x84   :  { %1300 = vmatprep.subr.bf16.mxu0 %v1299_v28 }
  0x86   :  { %1059 = vmatmul.mubr.f32.gmra.mrb[12].mxu0 %v883_v5 }
  0x87   :  { %1061 = vmatprep.mubr.f32.mxu0 %v886_v6  ;;  %1302 = vmatpush3.bf16.msra.mxu0 %v1299_v28 }
  0x88   :  { %1304 = vmatprep.subr.bf16.mxu0 %v1303_v47 }
  0x8a   :  { %1062 = vmatmul.mubr.f32.gmra.mrb[14].mxu0 %v887_v7 }
  0x8b   :  { %1306 = vmatpush3.bf16.msra.mxu0 %v1303_v47 }
 0x141   :  { %v1042_v29 = vpop.f32.mrb[0].mxu0 }
 0x142   :  { %v235_v30 = vpop.f32.mrb[1].mxu0 }
 0x143   :  { %1096 = vmatprep.mubr.f32.mxu1 %v235_v30 }
 0x144   :  { %1097 = vmatmul.mubr.f32.vlgmr.msra.gmra.mrb[0].mxu1 %v1042_v29 }
 0x145   :  { %v1045_v31 = vpop.f32.mrb[2].mxu0 }
 0x146   :  { %v245_v32 = vpop.f32.mrb[3].mxu0 }
 0x147   :  { %1099 = vmatprep.mubr.f32.mxu1 %v245_v32 }
 0x148   :  { %1100 = vmatmul.mubr.f32.gmra.mrb[2].mxu1 %v1045_v31 }
 0x149   :  { %v1048_v33 = vpop.f32.mrb[4].mxu0 }
 0x14a   :  { %v255_v34 = vpop.f32.mrb[5].mxu0 }
 0x14b   :  { %1102 = vmatprep.mubr.f32.mxu1 %v255_v34  ;;  %v1496_v34 = vmov 0.0  }
 0x14c   :  { %1103 = vmatmul.mubr.f32.gmra.mrb[4].mxu1 %v1048_v33  ;;  %v1494_v33 = vmov 0.0|0.0  }
 0x14d   :  { %v1051_v35 = vpop.f32.mrb[6].mxu0  ;;  %1307 = vmatprep.subr.bf16.mxu1 %v1494_v33 }
 0x14e   :  { %v265_v36 = vpop.f32.mrb[7].mxu0 }
 0x14f   :  { %1105 = vmatprep.mubr.f32.mxu1 %v265_v36 }
 0x150   :  { %1106 = vmatmul.mubr.f32.gmra.mrb[6].mxu1 %v1051_v35  ;;  %v1619_v35 = vld [vmem:[%s1679_s5] ss:$0 sm:$0xff] }
 0x151   :  { %v1054_v37 = vpop.f32.mrb[8].mxu0 }
 0x152   :  { %v275_v38 = vpop.f32.mrb[9].mxu0 }
 0x153   :  { %1108 = vmatprep.mubr.f32.mxu1 %v275_v38 }
 0x154   :  { %1109 = vmatmul.mubr.f32.gmra.mrb[8].mxu1 %v1054_v37 }
 0x155   :  { %v1057_v39 = vpop.f32.mrb[10].mxu0 }
 0x156   :  { %v285_v40 = vpop.f32.mrb[11].mxu0 }
 0x157   :  { %1111 = vmatprep.mubr.f32.mxu1 %v285_v40 }
 0x158   :  { %1112 = vmatmul.mubr.f32.gmra.mrb[10].mxu1 %v1057_v39 }
 0x159   :  { %v1060_v41 = vpop.f32.mrb[12].mxu0 }
 0x15a   :  { %v295_v42 = vpop.f32.mrb[13].mxu0 }
 0x15b   :  { %1114 = vmatprep.mubr.f32.mxu1 %v295_v42 }
 0x15c   :  { %1115 = vmatmul.mubr.f32.gmra.mrb[12].mxu1 %v1060_v41 }
 0x15d   :  { %v1063_v43 = vpop.f32.mrb[14].mxu0 }
 0x15e   :  { %v305_v44 = vpop.f32.mrb[15].mxu0 }
 0x15f   :  { %1117 = vmatprep.mubr.f32.mxu1 %v305_v44 }
 0x160   :  { %1118 = vmatmul.mubr.f32.gmra.mrb[14].mxu1 %v1063_v43 }
 0x161   :  { %1208 = vmatprep.mubr.msk.f32.mxu1 %vm1495_vm0, %v1496_v34 }
 0x217   :  { %v1098_v49 = vpop.f32.mrb[0].mxu1 }
 0x218   :  { %v460_v50 = vadd.f32 %v1098_v49, %v854_v48  ;;  %v454_v51 = vpop.f32.mrb[1].mxu1 }
 0x219   :  { %v455_v52 = vadd.f32 %v854_v48, %v454_v51 }
 0x21a   :  { %v534_v55 = vmax.f32 %v460_v50, 0.0 }
 0x21b   :  { %v533_v53 = vmax.f32 %v455_v52, 0.0  ;;  %v1101_v54 = vpop.f32.mrb[2].mxu1 }
 0x21c   :  { %v470_v56 = vadd.f32 %v1101_v54, %v854_v48  ;;  %v464_v57 = vpop.f32.mrb[3].mxu1 }
 0x21d   :  { %v465_v58 = vadd.f32 %v854_v48, %v464_v57  ;;  %1152 = vmatprep.mubr.f32.mxu0 %v533_v53 }
 0x21e   :  { %1153 = vmatmul.mubr.f32.vlgmr.msra.gmra.mrb[16].mxu0 %v534_v55  ;;  %v536_v61 = vmax.f32 %v470_v56, 0.0 }
 0x21f   :  { %v535_v59 = vmax.f32 %v465_v58, 0.0  ;;  %v1104_v60 = vpop.f32.mrb[4].mxu1 }
 0x220   :  { %v480_v62 = vadd.f32 %v1104_v60, %v854_v48  ;;  %v474_v63 = vpop.f32.mrb[5].mxu1 }
 0x221   :  { %v475_v0 = vadd.f32 %v854_v48, %v474_v63  ;;  %1155 = vmatprep.mubr.f32.mxu0 %v535_v59 }
 0x222   :  { %1156 = vmatmul.mubr.f32.gmra.mrb[18].mxu0 %v536_v61  ;;  %v538_v3 = vmax.f32 %v480_v62, 0.0 }
 0x223   :  { %v537_v1 = vmax.f32 %v475_v0, 0.0  ;;  %v1107_v2 = vpop.f32.mrb[6].mxu1 }
 0x224   :  { %v490_v4 = vadd.f32 %v1107_v2, %v854_v48  ;;  %v484_v5 = vpop.f32.mrb[7].mxu1 }
 0x225   :  { %v485_v6 = vadd.f32 %v854_v48, %v484_v5  ;;  %1158 = vmatprep.mubr.f32.mxu0 %v537_v1 }
 0x226   :  { %1159 = vmatmul.mubr.f32.gmra.mrb[20].mxu0 %v538_v3  ;;  %v540_v9 = vmax.f32 %v490_v4, 0.0 }
 0x227   :  { %v539_v7 = vmax.f32 %v485_v6, 0.0  ;;  %v1110_v8 = vpop.f32.mrb[8].mxu1 }
 0x228   :  { %v500_v10 = vadd.f32 %v1110_v8, %v854_v48  ;;  %v494_v11 = vpop.f32.mrb[9].mxu1 }
 0x229   :  { %v495_v12 = vadd.f32 %v854_v48, %v494_v11  ;;  %1161 = vmatprep.mubr.f32.mxu0 %v539_v7 }
 0x22a   :  { %1162 = vmatmul.mubr.f32.gmra.mrb[22].mxu0 %v540_v9  ;;  %v542_v15 = vmax.f32 %v500_v10, 0.0 }
 0x22b   :  { %v541_v13 = vmax.f32 %v495_v12, 0.0  ;;  %v1113_v14 = vpop.f32.mrb[10].mxu1 }
 0x22c   :  { %v510_v16 = vadd.f32 %v1113_v14, %v854_v48  ;;  %v504_v17 = vpop.f32.mrb[11].mxu1 }
 0x22d   :  { %v505_v18 = vadd.f32 %v854_v48, %v504_v17  ;;  %1164 = vmatprep.mubr.f32.mxu0 %v541_v13 }
 0x22e   :  { %1165 = vmatmul.mubr.f32.gmra.mrb[24].mxu0 %v542_v15  ;;  %v544_v21 = vmax.f32 %v510_v16, 0.0 }
 0x22f   :  { %v543_v19 = vmax.f32 %v505_v18, 0.0  ;;  %v1116_v20 = vpop.f32.mrb[12].mxu1 }
 0x230   :  { %v520_v22 = vadd.f32 %v1116_v20, %v854_v48  ;;  %v514_v23 = vpop.f32.mrb[13].mxu1 }
 0x231   :  { %v515_v24 = vadd.f32 %v854_v48, %v514_v23  ;;  %1167 = vmatprep.mubr.f32.mxu0 %v543_v19 }
 0x232   :  { %1168 = vmatmul.mubr.f32.gmra.mrb[26].mxu0 %v544_v21  ;;  %v546_v27 = vmax.f32 %v520_v22, 0.0 }
 0x233   :  { %v545_v25 = vmax.f32 %v515_v24, 0.0  ;;  %v1119_v26 = vpop.f32.mrb[14].mxu1 }
 0x234   :  { %v530_v28 = vadd.f32 %v1119_v26, %v854_v48  ;;  %v524_v29 = vpop.f32.mrb[15].mxu1 }
 0x235   :  { %v525_v30 = vadd.f32 %v854_v48, %v524_v29  ;;  %1170 = vmatprep.mubr.f32.mxu0 %v545_v25 }
 0x236   :  { %1171 = vmatmul.mubr.f32.gmra.mrb[28].mxu0 %v546_v27  ;;  %v548_v32 = vmax.f32 %v530_v28, 0.0  ;;  %v749_v28 = vld [vmem:[%s1680_s6] sm:$0xff] }
 0x237   :  { %v547_v31 = vmax.f32 %v525_v30, 0.0 }
 0x239   :  { %1173 = vmatprep.mubr.f32.mxu0 %v547_v31 }
 0x23a   :  { %1174 = vmatmul.mubr.f32.gmra.mrb[30].mxu0 %v548_v32 }
 0x2f1   :  { %v1154_v36 = vpop.f32.mrb[16].mxu0 }
 0x2f2   :  { %v644_v37 = vadd.f32 %v1154_v36, %v1619_v35  ;;  %v638_v38 = vpop.f32.mrb[17].mxu0 }
 0x2f3   :  { %v639_v39 = vadd.f32 %v1619_v35, %v638_v38 }
 0x2f4   :  { %v718_v40 = vmax.f32 %v644_v37, 0.0 }
 0x2f5   :  { %v717_v41 = vmax.f32 %v639_v39, 0.0  ;;  %v1157_v42 = vpop.f32.mrb[18].mxu0 }
 0x2f6   :  { %734 = vst [vmem:[#allocation11 + $0x8] sm:$0xff] %v718_v40  ;;  %v654_v43 = vadd.f32 %v1157_v42, %v1619_v35  ;;  %v648_v44 = vpop.f32.mrb[19].mxu0 }
 0x2f7   :  { %733 = vst [vmem:[#allocation11] sm:$0xff] %v717_v41  ;;  %v1308_v45 = vpack.c.bf16 %v718_v40, %v717_v41  ;;  %v649_v46 = vadd.f32 %v1619_v35, %v648_v44 }
 0x2f8   :  { %v720_v47 = vmax.f32 %v654_v43, 0.0 }
 0x2f9   :  { %v719_v48 = vmax.f32 %v649_v46, 0.0  ;;  %v1160_v49 = vpop.f32.mrb[20].mxu0  ;;  %1309 = vmatpush3.bf16.msra.mxu1 %v1308_v45 }
 0x2fa   :  { %736 = vst [vmem:[#allocation11 + $0x18] sm:$0xff] %v720_v47  ;;  %v664_v50 = vadd.f32 %v1160_v49, %v1619_v35  ;;  %v658_v51 = vpop.f32.mrb[21].mxu0  ;;  %1310 = vmatprep.subr.bf16.mxu1 %v1494_v33 }
 0x2fb   :  { %735 = vst [vmem:[#allocation11 + $0x10] sm:$0xff] %v719_v48  ;;  %v1311_v52 = vpack.c.bf16 %v720_v47, %v719_v48  ;;  %v659_v53 = vadd.f32 %v1619_v35, %v658_v51 }
 0x2fc   :  { %v722_v54 = vmax.f32 %v664_v50, 0.0 }
 0x2fd   :  { %v721_v55 = vmax.f32 %v659_v53, 0.0  ;;  %v1163_v56 = vpop.f32.mrb[22].mxu0  ;;  %1312 = vmatpush3.bf16.msra.mxu1 %v1311_v52 }
 0x2fe   :  { %738 = vst [vmem:[#allocation11 + $0x28] sm:$0xff] %v722_v54  ;;  %v674_v57 = vadd.f32 %v1163_v56, %v1619_v35  ;;  %v668_v58 = vpop.f32.mrb[23].mxu0  ;;  %1313 = vmatprep.subr.bf16.mxu1 %v1494_v33 }
 0x2ff   :  { %737 = vst [vmem:[#allocation11 + $0x20] sm:$0xff] %v721_v55  ;;  %v1314_v59 = vpack.c.bf16 %v722_v54, %v721_v55  ;;  %v669_v60 = vadd.f32 %v1619_v35, %v668_v58 }
 0x300   :  { %v724_v61 = vmax.f32 %v674_v57, 0.0 }
 0x301   :  { %v723_v62 = vmax.f32 %v669_v60, 0.0  ;;  %v1166_v63 = vpop.f32.mrb[24].mxu0  ;;  %1315 = vmatpush3.bf16.msra.mxu1 %v1314_v59 }
 0x302   :  { %740 = vst [vmem:[#allocation11 + $0x38] sm:$0xff] %v724_v61  ;;  %v684_v0 = vadd.f32 %v1166_v63, %v1619_v35  ;;  %v678_v1 = vpop.f32.mrb[25].mxu0  ;;  %1316 = vmatprep.subr.bf16.mxu1 %v1494_v33 }
 0x303   :  { %739 = vst [vmem:[#allocation11 + $0x30] sm:$0xff] %v723_v62  ;;  %v1317_v2 = vpack.c.bf16 %v724_v61, %v723_v62  ;;  %v679_v3 = vadd.f32 %v1619_v35, %v678_v1 }
 0x304   :  { %v726_v4 = vmax.f32 %v684_v0, 0.0 }
 0x305   :  { %v725_v5 = vmax.f32 %v679_v3, 0.0  ;;  %v1169_v6 = vpop.f32.mrb[26].mxu0  ;;  %1318 = vmatpush3.bf16.msra.mxu1 %v1317_v2 }
 0x306   :  { %742 = vst [vmem:[#allocation11 + $0x48] sm:$0xff] %v726_v4  ;;  %v694_v7 = vadd.f32 %v1169_v6, %v1619_v35  ;;  %v688_v8 = vpop.f32.mrb[27].mxu0  ;;  %1319 = vmatprep.subr.bf16.mxu1 %v1494_v33 }
 0x307   :  { %741 = vst [vmem:[#allocation11 + $0x40] sm:$0xff] %v725_v5  ;;  %v1320_v9 = vpack.c.bf16 %v726_v4, %v725_v5  ;;  %v689_v10 = vadd.f32 %v1619_v35, %v688_v8 }
 0x308   :  { %v728_v11 = vmax.f32 %v694_v7, 0.0 }
 0x309   :  { %v727_v12 = vmax.f32 %v689_v10, 0.0  ;;  %v1172_v13 = vpop.f32.mrb[28].mxu0  ;;  %1321 = vmatpush3.bf16.msra.mxu1 %v1320_v9 }
 0x30a   :  { %744 = vst [vmem:[#allocation11 + $0x58] sm:$0xff] %v728_v11  ;;  %v704_v14 = vadd.f32 %v1172_v13, %v1619_v35  ;;  %v698_v15 = vpop.f32.mrb[29].mxu0  ;;  %1322 = vmatprep.subr.bf16.mxu1 %v1494_v33 }
 0x30b   :  { %743 = vst [vmem:[#allocation11 + $0x50] sm:$0xff] %v727_v12  ;;  %v1323_v16 = vpack.c.bf16 %v728_v11, %v727_v12  ;;  %v699_v17 = vadd.f32 %v1619_v35, %v698_v15 }
 0x30c   :  { %v730_v18 = vmax.f32 %v704_v14, 0.0 }
 0x30d   :  { %v729_v19 = vmax.f32 %v699_v17, 0.0  ;;  %v1175_v20 = vpop.f32.mrb[30].mxu0  ;;  %1324 = vmatpush3.bf16.msra.mxu1 %v1323_v16 }
 0x30e   :  { %746 = vst [vmem:[#allocation11 + $0x68] sm:$0xff] %v730_v18  ;;  %v714_v21 = vadd.f32 %v1175_v20, %v1619_v35  ;;  %v708_v22 = vpop.f32.mrb[31].mxu0  ;;  %1325 = vmatprep.subr.bf16.mxu1 %v1494_v33 }
 0x30f   :  { %745 = vst [vmem:[#allocation11 + $0x60] sm:$0xff] %v729_v19  ;;  %v1326_v23 = vpack.c.bf16 %v730_v18, %v729_v19  ;;  %v709_v24 = vadd.f32 %v1619_v35, %v708_v22 }
 0x310   :  { %v732_v25 = vmax.f32 %v714_v21, 0.0 }
 0x311   :  { %v731_v26 = vmax.f32 %v709_v24, 0.0  ;;  %1327 = vmatpush3.bf16.msra.mxu1 %v1326_v23 }
 0x312   :  { %748 = vst [vmem:[#allocation11 + $0x78] sm:$0xff] %v732_v25  ;;  %1328 = vmatprep.subr.bf16.mxu1 %v1494_v33 }
 0x313   :  { %747 = vst [vmem:[#allocation11 + $0x70] sm:$0xff] %v731_v26  ;;  %v1329_v27 = vpack.c.bf16 %v732_v25, %v731_v26 }
 0x315   :  { %1330 = vmatpush3.bf16.msra.mxu1 %v1329_v27 }
 0x318   :  { %1209 = vmatmul.mubr.f32.vlgmr.msra.gmra.mrb[16].mxu1 %v749_v28 }
 0x319   :  { %1443 = shalt.err (!%p1440_p8)
}
 0x31a   :  { %s1444_s22 = scalar_lea.hbm %s1681_s7, 2048 }
 0x31b   :  { %p1445_p9 = scmp.ne.s32.totalorder %s1681_s7, %s1444_s22  ;;  %p1448_p10 = scmp.lt.u32.totalorder %s1444_s22, %s1681_s7 }
 0x31d   :  { %p1450_p11 = pnand %p1448_p10, %p1445_p9 }
 0x31f   :  { %1453 = shalt.err (!%p1450_p11)
}
 0x320   :  { %832 = dma.vmem_to_hbm [thread:$0]  %s827_s17, 2048, %s1681_s7, [#allocation5], %s1487_s15, %s1487_s15, %s1488_s16  }
 0x321   :  { %s1498_s26 = smov [#allocation12]  }
 0x322   :  { %s839_s27 = sshll.u32 %s1498_s26, 4  ;;  %s840_s27 = int_to_ptr.vmem [resolvable:$true] %s839_s27 }
 0x323   :  { %s1454_s29 = scalar_lea.vmem %s840_s27, 128  ;;  %p1459_p13 = scmp.lt.s32.totalorder %s840_s27, %s840_s27 }
 0x324   :  { %p1455_p12 = scmp.ne.s32.totalorder %s840_s27, %s1454_s29  ;;  %p1460_p0 = scmp.lt.s32.totalorder %s1454_s29, %s1454_s29 }
 0x326   :  { %p1461_p1 = por %p1460_p0, %p1459_p13 }
 0x328   :  { %p1462_p2 = pnand %p1461_p1, %p1455_p12 }
 0x3eb   :  { %v816_v29 = vpop.f32.mrb[16].mxu1 }
 0x3ec   :  { %820 = vst [vmem:[#allocation12] sm:$0xff] %v816_v29  ;;  %v1210_v30 = vpop.f32.mrb[17].mxu1 }
 0x3ed   :  { %1465 = shalt.err (!%p1462_p2)
}
 0x3ee   :  { %s1466_s30 = scalar_lea.hbm %s1682_s8, 128 }
 0x3ef   :  { %p1467_p3 = scmp.ne.s32.totalorder %s1682_s8, %s1466_s30  ;;  %p1470_p4 = scmp.lt.u32.totalorder %s1466_s30, %s1682_s8 }
 0x3f1   :  { %p1472_p5 = pnand %p1470_p4, %p1467_p3 }
 0x3f3   :  { %1475 = shalt.err (!%p1472_p5)
}
 0x3f4   :  { %842 = dma.vmem_to_hbm [thread:$0]  %s840_s27, 128, %s1682_s8, [#allocation13]  }
 0x3f5   :  { %1482 = dma.done.wait [#allocation5], 2048  }
 0x3f6   :  { %1483 = vsyncadd [#allocation5], 4294965248 }
 0x3f7   :  { %1484 = dma.done.wait [#allocation13], 128  }
 0x3f8   :  { %1485 = vsyncadd [#allocation13], 4294967168 }
 0x3f9   :  { %849 = vsyncpa [#allocation4], 1 }
 0x3fa   :  { %850 = vsyncpa [#allocation7], 1 }
 0x3fb   :  { %851 = vsyncpa [#allocation10], 1 }
 0x3fc   :  { %852 = vsyncpa [#allocation5], 1 }
 0x3fd   :  { %853 = vsyncpa [#allocation13], 1 }

</bundles_post_ra>
